<compile_context>
chip_gen: v5e
topology: v5e:2x2
jax: 0.10.0
libtpu: 0.0.40
codegen_flags: <defaults>
</compile_context>

<pallas_src>
import jax
import jax.numpy as jnp
import numpy as np
from jax import lax
from jax.experimental import pallas as pl
from jax.experimental.pallas import tpu as pltpu


def _rope_kernel(cos_ref, sin_ref, x_ref, o_ref):
    # cos_ref / sin_ref : VMEM (1, tS, 1, D)  float32 coefficient rows
    # x_ref   / o_ref   : VMEM (1, tS, H, D)  x.dtype
    x = x_ref[0].astype(jnp.float32)                      # (tS, H, D)
    d = x.shape[-1]
    x_next = pltpu.roll(x, d - 1, axis=2)                 # x_next[..., j] = x[..., j+1]
    x_prev = pltpu.roll(x, 1, axis=2)                     # x_prev[..., j] = x[..., j-1]
    lane = lax.broadcasted_iota(jnp.int32, x.shape, 2)
    partner = jnp.where(lane % 2 == 0, x_next, x_prev)    # rotation partner per lane
    out = x * cos_ref[0] + partner * sin_ref[0]           # (tS,1,D) bcast over heads
    o_ref[0] = out.astype(o_ref.dtype)


def _pick_seq_tile(S, H, D, x_itemsize, budget_bytes=12 * 1024 * 1024):
    # Per seq row: double-buffered x in/out blocks + 2 f32 coefficient rows,
    # plus ~4 f32 block-sized kernel temporaries (rolls / select / products).
    per_row = 2 * (2 * H * D * x_itemsize + 2 * D * 4) + 4 * H * D * 4
    ts = max(1, min(S, budget_bytes // max(per_row, 1)))
    if ts < S and ts > 8:
        ts = (ts // 8) * 8            # keep partial tiles sublane-friendly
    return int(ts)


def rotary_embedding_pallas(x, cos, sin, pos):
    """Functional equivalent of LlamaMSRotaryEmbedding.forward."""
    B, S, H, D = x.shape
    rot_half = cos.shape[3]
    rot_dim = 2 * rot_half
    assert 2 <= rot_dim <= D and D % 2 == 0

    f32 = jnp.float32
    # Length-S window of the cache at `pos` (clamped slice -> no OOB read).
    cos_s = lax.dynamic_slice_in_dim(cos.astype(f32), pos, S, axis=1)  # (1,S,1,rh)
    sin_s = lax.dynamic_slice_in_dim(sin.astype(f32), pos, S, axis=1)  # (1,S,1,rh)

    def interleave(a, b):  # (...,rh),(...,rh) -> (...,2*rh) as [a0,b0,a1,b1,...]
        return jnp.stack([a, b], axis=-1).reshape(a.shape[:-1] + (2 * a.shape[-1],))

    cos_e = interleave(cos_s, cos_s)      # [ c0, c0,  c1, c1, ...]
    sin_m = interleave(-sin_s, sin_s)     # [-s0, s0, -s1, s1, ...]
    pad = D - rot_dim
    if pad > 0:  # pass-through channels: multiply by 1, add 0
        cos_e = jnp.concatenate([cos_e, jnp.ones((1, S, 1, pad), f32)], axis=-1)
        sin_m = jnp.concatenate([sin_m, jnp.zeros((1, S, 1, pad), f32)], axis=-1)

    ts = _pick_seq_tile(S, H, D, x.dtype.itemsize)
    n_s = pl.cdiv(S, ts)

    grid_spec = pltpu.PrefetchScalarGridSpec(
        num_scalar_prefetch=0,
        grid=(n_s, B),  # batch innermost -> coefficient blocks reused across batch
        in_specs=[
            pl.BlockSpec((1, ts, 1, D), lambda s, b: (0, s, 0, 0)),
            pl.BlockSpec((1, ts, 1, D), lambda s, b: (0, s, 0, 0)),
            pl.BlockSpec((1, ts, H, D), lambda s, b: (b, s, 0, 0)),
        ],
        out_specs=pl.BlockSpec((1, ts, H, D), lambda s, b: (b, s, 0, 0)),
    )

    return pl.pallas_call(
        _rope_kernel,
        out_shape=jax.ShapeDtypeStruct((B, S, H, D), x.dtype),
        grid_spec=grid_spec,
        compiler_params=pltpu.CompilerParams(
            dimension_semantics=("parallel", "parallel")),
    )(cos_e, sin_m, x)


def rotary_embedding_ref(x, cos, sin, pos):
    """Pure-JAX reference mirroring the PyTorch forward (output in x.dtype)."""
    rot_dim = 2 * cos.shape[3]
    S = x.shape[1]
    x_rot = x[..., :rot_dim]
    x1 = x_rot[..., 0::2]
    x2 = x_rot[..., 1::2]
    cos_x = lax.dynamic_slice_in_dim(cos, pos, S, axis=1)
    sin_x = lax.dynamic_slice_in_dim(sin, pos, S, axis=1)
    real = cos_x * x1 - sin_x * x2
    imag = sin_x * x1 + cos_x * x2
    out_rot = jnp.stack([real, imag], axis=-1).reshape(x_rot.shape).astype(x.dtype)
    return jnp.concatenate([out_rot, x[..., rot_dim:]], axis=-1)


def make_cos_sin_cache(max_seq, rot_dim, theta=10000.0, dtype=jnp.float32):
    """Same formula as LlamaMSRotaryEmbedding.get_cos_sin_cache; cache layout
    [1, max_seq, 1, rot_dim // 2]."""
    pos = jnp.arange(0, rot_dim, 2, dtype=dtype)
    inv_freq = 1.0 / (theta ** (pos / rot_dim))
    idx = jnp.arange(max_seq, dtype=dtype)
    freqs = jnp.outer(idx, inv_freq)                      # (max_seq, rot_dim//2)
    cos = jnp.cos(freqs).reshape(1, max_seq, 1, -1).astype(dtype)
    sin = jnp.sin(freqs).reshape(1, max_seq, 1, -1).astype(dtype)
    return cos, sin


if __name__ == "__main__":
    # Small shapes consistent with the module's forward:
    # x [B, S, H, D], cos/sin [1, max_seq, 1, rot_dim // 2], scalar pos offset.
    # D = 128 keeps the output lane-dense; rot_dim < D exercises pass-through.
    B, S, H, D = 2, 8, 4, 128
    max_seq, rot_dim = 32, 64
    pos = 5

    key = jax.random.PRNGKey(0)
    x = jax.random.normal(key, (B, S, H, D), dtype=jnp.float32)
    cos, sin = make_cos_sin_cache(max_seq, rot_dim)

    out = jax.block_until_ready(rotary_embedding_pallas(x, cos, sin, pos))
    ref = jax.block_until_ready(rotary_embedding_ref(x, cos, sin, pos))

    assert out.shape == (B, S, H, D), out.shape
    np.testing.assert_allclose(np.asarray(out), np.asarray(ref), rtol=1e-6, atol=1e-6)
    print("KERNEL_OK")
</pallas_src>

<mosaic_0001>
module attributes {stable_mosaic.version = 11 : i64} {
  func.func @_rope_kernel(%arg0: i32, %arg1: i32, %arg2: memref<1x8x1x128xf32, #tpu.memory_space<vmem>>, %arg3: memref<1x8x1x128xf32, #tpu.memory_space<vmem>>, %arg4: memref<1x8x4x128xf32, #tpu.memory_space<vmem>>, %arg5: memref<1x8x4x128xf32, #tpu.memory_space<vmem>>) attributes {dimension_semantics = [#tpu.dimension_semantics<parallel>, #tpu.dimension_semantics<parallel>], iteration_bounds = array<i64: 1, 2>, scalar_prefetch = 0 : i64, scratch_operands = 0 : i64, tpu.core_type = #tpu.core_type<tc>, window_params = [{transform_indices = @transform_0, window_bounds = array<i64: 1, 8, 1, 128>}, {transform_indices = @transform_1, window_bounds = array<i64: 1, 8, 1, 128>}, {transform_indices = @transform_2, window_bounds = array<i64: 1, 8, 4, 128>}, {transform_indices = @transform_3, window_bounds = array<i64: 1, 8, 4, 128>}]} {
    %c0 = arith.constant 0 : index
    %c0_0 = arith.constant 0 : index
    %c0_1 = arith.constant 0 : index
    %c0_2 = arith.constant 0 : index
    %0 = vector.load %arg4[%c0, %c0_0, %c0_1, %c0_2] : memref<1x8x4x128xf32, #tpu.memory_space<vmem>>, vector<1x8x4x128xf32>
    %1 = vector.shape_cast %0 : vector<1x8x4x128xf32> to vector<8x4x128xf32>
    %c127_i32 = arith.constant 127 : i32
    %2 = tpu.dynamic_rotate %1 by %c127_i32 dim 2 : vector<8x4x128xf32>, i32 -> vector<8x4x128xf32>
    %c1_i32 = arith.constant 1 : i32
    %3 = tpu.dynamic_rotate %1 by %c1_i32 dim 2 : vector<8x4x128xf32>, i32 -> vector<8x4x128xf32>
    %4 = tpu.iota {dimensions = array<i32: 2>} : vector<8x4x128xi32>
    %c2_i32 = arith.constant 2 : i32
    %c0_i32 = arith.constant 0 : i32
    %5 = arith.cmpi eq, %c2_i32, %c0_i32 : i32
    %c1_i32_3 = arith.constant 1 : i32
    %6 = arith.select %5, %c1_i32_3, %c2_i32 : i32
    %7 = vector.broadcast %6 : i32 to vector<8x4x128xi32>
    %8 = arith.remsi %4, %7 : vector<8x4x128xi32>
    %c0_i32_4 = arith.constant 0 : i32
    %9 = vector.broadcast %c0_i32_4 : i32 to vector<8x4x128xi32>
    %10 = arith.cmpi ne, %8, %9 : vector<8x4x128xi32>
    %c0_i32_5 = arith.constant 0 : i32
    %11 = vector.broadcast %c0_i32_5 : i32 to vector<8x4x128xi32>
    %12 = arith.cmpi slt, %8, %11 : vector<8x4x128xi32>
    %c0_i32_6 = arith.constant 0 : i32
    %13 = arith.cmpi slt, %6, %c0_i32_6 : i32
    %14 = vector.broadcast %13 : i1 to vector<8x4x128xi1>
    %15 = vector.broadcast %14 : vector<8x4x128xi1> to vector<8x4x128xi1>
    %16 = arith.xori %12, %15 : vector<8x4x128xi1>
    %17 = arith.andi %16, %10 : vector<8x4x128xi1>
    %18 = vector.broadcast %6 : i32 to vector<8x4x128xi32>
    %19 = arith.addi %8, %18 : vector<8x4x128xi32>
    %20 = arith.select %17, %19, %8 : vector<8x4x128xi1>, vector<8x4x128xi32>
    %c0_i32_7 = arith.constant 0 : i32
    %21 = vector.broadcast %c0_i32_7 : i32 to vector<8x4x128xi32>
    %22 = arith.cmpi eq, %20, %21 : vector<8x4x128xi32>
    %23 = arith.select %22, %2, %3 : vector<8x4x128xi1>, vector<8x4x128xf32>
    %c0_8 = arith.constant 0 : index
    %c0_9 = arith.constant 0 : index
    %c0_10 = arith.constant 0 : index
    %c0_11 = arith.constant 0 : index
    %24 = vector.load %arg2[%c0_8, %c0_9, %c0_10, %c0_11] : memref<1x8x1x128xf32, #tpu.memory_space<vmem>>, vector<1x8x1x128xf32>
    %25 = vector.shape_cast %24 : vector<1x8x1x128xf32> to vector<8x1x128xf32>
    %26 = vector.broadcast %25 : vector<8x1x128xf32> to vector<8x4x128xf32>
    %27 = arith.mulf %1, %26 : vector<8x4x128xf32>
    %c0_12 = arith.constant 0 : index
    %c0_13 = arith.constant 0 : index
    %c0_14 = arith.constant 0 : index
    %c0_15 = arith.constant 0 : index
    %28 = vector.load %arg3[%c0_12, %c0_13, %c0_14, %c0_15] : memref<1x8x1x128xf32, #tpu.memory_space<vmem>>, vector<1x8x1x128xf32>
    %29 = vector.shape_cast %28 : vector<1x8x1x128xf32> to vector<8x1x128xf32>
    %30 = vector.broadcast %29 : vector<8x1x128xf32> to vector<8x4x128xf32>
    %31 = arith.mulf %23, %30 : vector<8x4x128xf32>
    %32 = arith.addf %27, %31 : vector<8x4x128xf32>
    %c0_16 = arith.constant 0 : index
    %c0_17 = arith.constant 0 : index
    %c0_18 = arith.constant 0 : index
    %c0_19 = arith.constant 0 : index
    %33 = vector.load %arg5[%c0_16, %c0_17, %c0_18, %c0_19] : memref<1x8x4x128xf32, #tpu.memory_space<vmem>>, vector<1x8x4x128xf32>
    %34 = vector.shape_cast %33 : vector<1x8x4x128xf32> to vector<8x4x128xf32>
    %35 = vector.shape_cast %32 : vector<8x4x128xf32> to vector<1x8x4x128xf32>
    tpu.vector_store %arg5[%c0_16, %c0_17, %c0_18, %c0_19], %35 {strides = array<i32>} : memref<1x8x4x128xf32, #tpu.memory_space<vmem>>, vector<1x8x4x128xf32>,
    return
  }
  func.func @transform_0(%arg0: i32, %arg1: i32) -> (i32, i32, i32, i32) {
    %c0_i32 = arith.constant 0 : i32
    %c0_i32_0 = arith.constant 0 : i32
    %c0_i32_1 = arith.constant 0 : i32
    %c0_i32_2 = arith.constant 0 : i32
    return %c0_i32, %arg0, %c0_i32_0, %c0_i32_1 : i32, i32, i32, i32
  }
  func.func @transform_1(%arg0: i32, %arg1: i32) -> (i32, i32, i32, i32) {
    %c0_i32 = arith.constant 0 : i32
    %c0_i32_0 = arith.constant 0 : i32
    %c0_i32_1 = arith.constant 0 : i32
    %c0_i32_2 = arith.constant 0 : i32
    return %c0_i32, %arg0, %c0_i32_0, %c0_i32_1 : i32, i32, i32, i32
  }
  func.func @transform_2(%arg0: i32, %arg1: i32) -> (i32, i32, i32, i32) {
    %c0_i32 = arith.constant 0 : i32
    %c0_i32_0 = arith.constant 0 : i32
    %c0_i32_1 = arith.constant 0 : i32
    return %arg1, %arg0, %c0_i32, %c0_i32_0 : i32, i32, i32, i32
  }
  func.func @transform_3(%arg0: i32, %arg1: i32) -> (i32, i32, i32, i32) {
    %c0_i32 = arith.constant 0 : i32
    %c0_i32_0 = arith.constant 0 : i32
    %c0_i32_1 = arith.constant 0 : i32
    return %arg1, %arg0, %c0_i32, %c0_i32_0 : i32, i32, i32, i32
  }
}

</mosaic_0001>

<bundles_post_ra>
// kernel: tpu_custom_call.1
= control target key start
LH: loop header
LB: loop body
LE: loop exit
PB: predicated region body
PF: predicated region fallthrough
CT: control target
= control target key end

     0   :  { %s1098_s0 = inlined_call_operand.hbm [shape: f32[1,8,1,128], index: 0, kind: input, shape index: {}]   ;;  %s1099_s1 = inlined_call_operand.hbm [shape: f32[1,8,1,128], index: 1, kind: input, shape index: {}]   ;;  %s1100_s2 = inlined_call_operand.hbm [shape: f32[2,8,4,128], index: 2, kind: input, shape index: {}]   ;;  %s1101_s3 = inlined_call_operand.hbm [shape: f32[2,8,4,128], index: 3, kind: output, shape index: {}]  }
   0x1   :  { %1102 = sst [smem:[#allocation13_spill]] %s1098_s0 }
   0x2   :  { %8 = vsyncpa [#allocation3], 0 }
   0x3   :  { %9 = vsyncpa [#allocation6], 0 }
   0x4   :  { %10 = vsyncpa [#allocation4], 0 }
   0x5   :  { %12 = vsyncpa [#allocation4 + $0x1], 0  ;;  %s885_s12 = smov 0   ;;  %s887_s13 = smov 0  }
   0x6   :  { %s889_s14 = smov 0   ;;  %s891_s15 = smov 0  }
   0x7   :  { %s893_s16 = smov 0   ;;  %s895_s17 = smov 0  }
   0x8 LB: > { %s916_s18 = sadd.s32 4294967295, %s853_s17   ;;  %s546_s19 = sadd.s32 4294967294, %s853_s17   ;;  %s853_s17 = sphi %s895_s17, %s18_s17   ;;  %s849_s16 = sphi %s893_s16, %s1115_s16   ;;  %s845_s15 = sphi %s891_s15, %s1114_s15   ;;  %s841_s14 = sphi %s889_s14, %s1113_s14   ;;  %s837_s13 = sphi %s887_s13, %s1112_s13   ;;  %s833_s12 = sphi %s885_s12, %s1111_s12  }
   0x9   : > { %p104_p0 = scmp.ne.s32.totalorder %s837_s13, %s833_s12  ;;  %p105_p1 = scmp.eq.s32.totalorder %s916_s18, 0 }
   0xa   : > { %p130_p2 = scmp.eq.s32.totalorder %s916_s18, 1  ;;  %p136_p3 = scmp.eq.s32.totalorder %s546_s19, 1 }
   0xb   : > { %p925_p4 = por %p105_p1, %p104_p0  ;;  %p547_p5 = scmp.ge.s32.totalorder %s853_s17, 1 }
   0xc   : > { %p930_p6 = por %p136_p3, %p104_p0  ;;  %p143_p7 = scmp.lt.s32.totalorder %s853_s17, 3 }
   0xd   : > { %s1105_s0 = sld [smem:[#allocation13_spill]]  ;;  %s855_s26 = smov [#allocation2]  }
   0xe   : > { %p938_p8 = pnand %p547_p5, %p143_p7  ;;  %s158_s27 = sshll.u32 %s855_s26, 4  ;;  %s159_s27 = int_to_ptr.vmem [resolvable:$true] %s158_s27 }
   0xf   : > { %p550_p11 = scmp.ge.s32.totalorder %s853_s17, 2  ;;  %s172_s30 = sshll.u32 %s1099_s1, 4  ;;  %s173_s30 = int_to_ptr.hbm [resolvable:$true] %s172_s30 }
  0x10   : > { %p578_p9 = pneg %p938_p8  ;;  %s856_s4 = smov 16  }
  0x11   : > { %s857_s5 = smov 1   ;;  %s858_s6 = smov [#allocation5]  }
  0x12   : > { %p579_p10 = pnand %p578_p9, %p105_p1  ;;  %s174_s7 = sshll.u32 %s858_s6, 4  ;;  %s175_s7 = int_to_ptr.vmem [resolvable:$true] %s174_s7 }
  0x13   : > { %s156_s24 = sshll.u32 %s1105_s0, 4  ;;  %s27_s8 = sadd.s32 1, %s849_s16  ;;  %s157_s24 = int_to_ptr.hbm [resolvable:$true] %s156_s24 }
  0x14   : > { %581 = dma.hbm_to_vmem [thread:$0]  (!%p579_p10), %s157_s24, 128, %s159_s27, [#allocation3], %s856_s4, %s856_s4, %s857_s5  }
  0x15   : > { %584 = dma.hbm_to_vmem [thread:$0]  (!%p579_p10), %s173_s30, 128, %s175_s7, [#allocation6], %s856_s4, %s856_s4, %s857_s5  }
  0x16   : > { %s91_s9 = sadd.s32 1, %s841_s14  ;;  %p28_p12 = scmp.ge.s32.totalorder %s27_s8, 2 }
  0x17   : > { %p98_p13 = scmp.ne.s32.totalorder %s841_s14, %s837_s13  ;;  %p99_p0 = scmp.eq.s32.totalorder %s853_s17, 0 }
  0x18   : > { %p595_p3 = scmp.lt.s32.totalorder %s853_s17, 2  ;;  %s1117_s8 = smov (%p28_p12, %s27_s8), 0 }
  0x19   : > { %p958_p5 = por %p99_p0, %p98_p13  ;;  %p964_p7 = por %p130_p2, %p98_p13 }
  0x1a   : > { %s86_s19 = ssub.s32 %s849_s16, %s1117_s8  ;;  %s188_s22 = sand.u32 1, %s853_s17  }
  0x1b   : > { %p89_p9 = scmp.eq.s32.totalorder %s86_s19, 0  ;;  %s190_s23 = sand.u32 1, %s841_s14  }
  0x1c   : > { %s564_s24 = sshll.u32 %s849_s16, 5  ;;  %s551_s27 = sshll.u32 %s190_s23, 5 }
  0x1d   : > { %s974_s26 = scalar_select %p89_p9, %s841_s14, %s91_s9  }
  0x1e   : > { %s199_s30 = scalar_lea.hbm %s1100_s2, %s564_s24  ;;  %s192_s5 = scalar_lea.vmem [#allocation7], %s551_s27 }
  0x1f   : > { %s200_s4 = sshll.u32 %s199_s30, 4  ;;  %s202_s6 = sshll.u32 %s192_s5, 4  ;;  %s201_s4 = int_to_ptr.hbm [resolvable:$true] %s200_s4  ;;  %s203_s6 = int_to_ptr.vmem [resolvable:$true] %s202_s6 }
  0x20   : > { %p586_p2 = pnand %p595_p3, %p958_p5  ;;  %s189_s7 = scalar_lea.sflag [#allocation3], %s188_s22 }
  0x21   : > { %s859_s0 = smov 64   ;;  %s860_s19 = smov 4  }
  0x22   : > { %588 = dma.hbm_to_vmem [thread:$0]  (!%p586_p2), %s201_s4, 512, %s203_s6, %s189_s7, %s859_s0, %s859_s0, %s860_s19  }
  0x23   : > { %214 = sbr.rel (%p938_p8) target bundleno = 212 (0xd4), region = 32 }
  0x28   : > { %816 = dma.done.wait (%p105_p1), [#allocation3], 128  }
  0x29   : > { %818 = vsyncadd (%p105_p1), [#allocation3], 4294967168 }
  0x2a   : > { %820 = dma.done.wait (%p105_p1), [#allocation6], 128  }
  0x2b   : > { %822 = vsyncadd (%p105_p1), [#allocation6], 4294967168  ;;  %s226_s0 = sand.u32 1, %s916_s18   ;;  %s228_s9 = sand.u32 1, %s837_s13  }
  0x2c   : > { %s997_s25 = sshll.u32 %s228_s9, 5  ;;  %s227_s10 = scalar_lea.sflag [#allocation3], %s226_s0 }
  0x2d   : > { %s230_s22 = scalar_lea.vmem [#allocation7], %s997_s25 }
  0x2e   : > { %824 = dma.done.wait (%p925_p4), %s227_s10, 512  }
  0x2f   : > { %826 = vsyncadd (%p925_p4), %s227_s10, 4294966784  ;;  %v1004_v0 = vld [vmem:[%s230_s22 + $0x8] sm:$0xf]  ;;  %s861_s23 = smov 127   ;;  %v258_v1 = vld [vmem:[%s230_s22] sm:$0xf]  ;;  %v298_v10 = vlaneseq }
  0x30   : > { %270 = vrot.lane.b32.xlu1 %v1004_v0, %s861_s23  ;;  %266 = vrot.lane.b32.xlu0 %v258_v1, %s861_s23  ;;  %v1007_v2 = vld [vmem:[%s230_s22 + $0x10] sm:$0xf]  ;;  %v261_v3 = vld [vmem:[%s230_s22 + $0xc] sm:$0xf]  ;;  %s862_s18 = smov 1   ;;  %s1029_s20 = scalar_lea.vmem [#allocation8], %s997_s25 }
  0x31   : > { %274 = vrot.lane.b32.xlu2 %v1007_v2, %s861_s23  ;;  %v259_v4 = vld [vmem:[%s230_s22 + $0x4] sm:$0xf]  ;;  %v1010_v5 = vld [vmem:[%s230_s22 + $0x14] sm:$0xf]  ;;  %v1013_v6 = vld [vmem:[%s230_s22 + $0x1c] sm:$0xf] }
  0x32   : > { %v264_v7 = vld [vmem:[%s230_s22 + $0x18] sm:$0xf]  ;;  %v299_v11 = vand.u32 127, %v298_v10  ;;  %v658_v14 = vld [vmem:[#allocation2] ss:$0 sm:$0xff]  ;;  %s565_s24 = sshll.u32 %s845_s15, 5 }
  0x33   : > { %v665_v16 = vld [vmem:[#allocation5] ss:$0 sm:$0xff]  ;;  %v353_v18 = vmul.f32 %v658_v14, %v258_v1  ;;  %v660_v22 = vld [vmem:[#allocation2 + $0x3] ss:$0 sm:$0xff]  ;;  %v666_v25 = vld [vmem:[#allocation5 + $0x3] ss:$0 sm:$0xff]  ;;  %s431_s29 = scalar_lea.hbm %s1101_s3, %s565_s24 }
  0x34   : > { %v304_v13 = vand.u32 1, %v299_v11  ;;  %v356_v26 = vmul.f32 %v660_v22, %v261_v3  ;;  %v664_v32 = vld [vmem:[#allocation2 + $0x6] ss:$0 sm:$0xff]  ;;  %v667_v34 = vld [vmem:[#allocation5 + $0x6] ss:$0 sm:$0xff]  ;;  %s432_s30 = sshll.u32 %s1029_s20, 4  ;;  %s433_s30 = int_to_ptr.vmem [resolvable:$true] %s432_s30 }
  0x35   : > { %v359_v36 = vmul.f32 %v664_v32, %v264_v7  ;;  %v657_v40 = vld [vmem:[#allocation2 + $0x2] ss:$0 sm:$0xff]  ;;  %v661_v41 = vld [vmem:[#allocation2 + $0x1] ss:$0 sm:$0xff]  ;;  %v668_v43 = vld [vmem:[#allocation5 + $0x2] ss:$0 sm:$0xff] }
  0x36   : > { %vm1022_vm0 = vcmp.eq.s32.totalorder %v304_v13, 0  ;;  %v669_v44 = vld [vmem:[#allocation5 + $0x1] ss:$0 sm:$0xff]  ;;  %v355_v45 = vmul.f32 %v657_v40, %v1004_v0  ;;  %v354_v47 = vmul.f32 %v661_v41, %v259_v4  ;;  %v662_v53 = vld [vmem:[#allocation2 + $0x5] ss:$0 sm:$0xff]  ;;  %s434_s4 = sshll.u32 %s431_s29, 4  ;;  %s435_s4 = int_to_ptr.hbm [resolvable:$true] %s434_s4 }
  0x37   : > { %v659_v55 = vld [vmem:[#allocation2 + $0x4] ss:$0 sm:$0xff]  ;;  %v670_v57 = vld [vmem:[#allocation5 + $0x5] ss:$0 sm:$0xff]  ;;  %v671_v58 = vld [vmem:[#allocation5 + $0x4] ss:$0 sm:$0xff]  ;;  %v358_v59 = vmul.f32 %v662_v53, %v1010_v5 }
  0x38   : > { %272 = vrot.lane.b32.xlu1 %v261_v3, %s861_s23  ;;  %268 = vrot.lane.b32.xlu0 %v259_v4, %s861_s23  ;;  %v357_v61 = vmul.f32 %v659_v55, %v1007_v2  ;;  %s418_s15 = scalar_lea.sflag [#allocation4], %s228_s9  ;;  %s777_s5 = sshra.s32 %s435_s4, 4  ;;  %s778_s5 = int_to_ptr.hbm [resolvable:$true] %s777_s5 }
  0x39   : > { %276 = vrot.lane.b32.xlu2 %v1010_v5, %s861_s23  ;;  %s779_s6 = scalar_lea.hbm %s778_s5, 32  ;;  %s783_s0 = scalar_lea.hbm %s1101_s3, 64 }
  0x3a   : > { %p780_p1 = scmp.ne.s32.totalorder %s778_s5, %s779_s6  ;;  %p784_p10 = scmp.lt.s32.totalorder %s778_s5, %s1101_s3 }
  0x3b   : > { %p785_p12 = scmp.lt.s32.totalorder %s783_s0, %s779_s6 }
  0x3c   : > { %p781_p4 = pnand %p780_p1, %p964_p7 }
  0x3d   : > { %p786_p13 = por %p785_p12, %p784_p10 }
  0x3e   : > { %p782_p8 = pneg %p781_p4 }
  0x40   : > { %280 = vrot.lane.b32.xlu1 %v1013_v6, %s861_s23  ;;  %278 = vrot.lane.b32.xlu0 %v264_v7, %s861_s23  ;;  %p787_p0 = pnand %p786_p13, %p782_p8 }
  0x41   : > { %282 = vrot.lane.b32.xlu2 %v258_v1, %s862_s18 }
  0x48   : > { %286 = vrot.lane.b32.xlu1 %v1004_v0, %s862_s18  ;;  %284 = vrot.lane.b32.xlu0 %v259_v4, %s862_s18 }
  0x49   : > { %288 = vrot.lane.b32.xlu2 %v261_v3, %s862_s18 }
  0x50   : > { %292 = vrot.lane.b32.xlu1 %v1010_v5, %s862_s18  ;;  %290 = vrot.lane.b32.xlu0 %v1007_v2, %s862_s18  ;;  %v672_v2 = vld [vmem:[#allocation5 + $0x7] ss:$0 sm:$0xff] }
  0x51   : > { %294 = vrot.lane.b32.xlu2 %v264_v7, %s862_s18  ;;  %v663_v7 = vld [vmem:[#allocation2 + $0x7] ss:$0 sm:$0xff] }
  0x58   : > { %296 = vrot.lane.b32.xlu0 %v1013_v6, %s862_s18 }
  0x8b   : > { %v1020_v8 = vpop.permute.xlu2 %274 }
  0x93   : > { %v277_v9 = vpop.permute.xlu2 %276 }
  0x9b   : > { %v283_v12 = vpop.permute.xlu2 %282 }
  0xa2   : > { %v271_v17 = vpop.permute.xlu1 %270  ;;  %v267_v19 = vpop.permute.xlu0 %266 }
  0xa3   : > { %v313_v20 = vsel %vm1022_vm0, %v267_v19, %v283_v12  ;;  %v289_v24 = vpop.permute.xlu2 %288 }
  0xa4   : > { %v393_v21 = vmul.f32 %v665_v16, %v313_v20 }
  0xa6   : > { %v401_v23 = vadd.f32 %v393_v21, %v353_v18 }
  0xa8   : > { %409 = vst [vmem:[%s1029_s20] sm:$0xf] %v401_v23 }
  0xaa   : > { %v273_v27 = vpop.permute.xlu1 %272  ;;  %v269_v29 = vpop.permute.xlu0 %268 }
  0xab   : > { %v316_v28 = vsel %vm1022_vm0, %v273_v27, %v289_v24  ;;  %v295_v33 = vpop.permute.xlu2 %294 }
  0xac   : > { %v396_v30 = vmul.f32 %v666_v25, %v316_v28 }
  0xae   : > { %v404_v31 = vadd.f32 %v396_v30, %v356_v26 }
  0xb0   : > { %412 = vst [vmem:[%s1029_s20 + $0xc] sm:$0xf] %v404_v31 }
  0xb2   : > { %v281_v35 = vpop.permute.xlu1 %280  ;;  %v279_v37 = vpop.permute.xlu0 %278 }
  0xb3   : > { %v319_v38 = vsel %vm1022_vm0, %v279_v37, %v295_v33 }
  0xb4   : > { %v399_v39 = vmul.f32 %v667_v34, %v319_v38 }
  0xb6   : > { %v407_v42 = vadd.f32 %v399_v39, %v359_v36 }
  0xb8   : > { %415 = vst [vmem:[%s1029_s20 + $0x18] sm:$0xf] %v407_v42 }
  0xba   : > { %v287_v46 = vpop.permute.xlu1 %286  ;;  %v285_v49 = vpop.permute.xlu0 %284 }
  0xbb   : > { %v315_v48 = vsel %vm1022_vm0, %v271_v17, %v287_v46  ;;  %v314_v51 = vsel %vm1022_vm0, %v269_v29, %v285_v49 }
  0xbc   : > { %v395_v50 = vmul.f32 %v668_v43, %v315_v48  ;;  %v394_v52 = vmul.f32 %v669_v44, %v314_v51 }
  0xbe   : > { %v403_v54 = vadd.f32 %v395_v50, %v355_v45  ;;  %v402_v56 = vadd.f32 %v394_v52, %v354_v47 }
  0xc0   : > { %411 = vst [vmem:[%s1029_s20 + $0x8] sm:$0xf] %v403_v54 }
  0xc1   : > { %410 = vst [vmem:[%s1029_s20 + $0x4] sm:$0xf] %v402_v56 }
  0xc2   : > { %v293_v60 = vpop.permute.xlu1 %292  ;;  %v291_v63 = vpop.permute.xlu0 %290 }
  0xc3   : > { %v318_v62 = vsel %vm1022_vm0, %v277_v9, %v293_v60  ;;  %v317_v1 = vsel %vm1022_vm0, %v1020_v8, %v291_v63  ;;  %v360_v9 = vmul.f32 %v663_v7, %v1013_v6 }
  0xc4   : > { %v398_v0 = vmul.f32 %v670_v57, %v318_v62  ;;  %v397_v3 = vmul.f32 %v671_v58, %v317_v1 }
  0xc6   : > { %v406_v4 = vadd.f32 %v398_v0, %v358_v59  ;;  %v405_v5 = vadd.f32 %v397_v3, %v357_v61 }
  0xc8   : > { %414 = vst [vmem:[%s1029_s20 + $0x14] sm:$0xf] %v406_v4 }
  0xc9   : > { %413 = vst [vmem:[%s1029_s20 + $0x10] sm:$0xf] %v405_v5 }
  0xca   : > { %v297_v10 = vpop.permute.xlu0 %296 }
  0xcb   : > { %v320_v8 = vsel %vm1022_vm0, %v281_v35, %v297_v10 }
  0xcc   : > { %v400_v11 = vmul.f32 %v672_v2, %v320_v8 }
  0xce   : > { %v408_v12 = vadd.f32 %v400_v11, %v360_v9 }
  0xd0   : > { %416 = vst [vmem:[%s1029_s20 + $0x1c] sm:$0xf] %v408_v12 }
  0xd1   : > { %790 = shalt.err (!%p787_p0)
}
  0xd2   : > { %s863_s9 = smov 64   ;;  %s864_s22 = smov 4  }
  0xd3   : > { %576 = dma.vmem_to_hbm [thread:$0]  (%p964_p7), %s433_s30, 512, %s435_s4, %s418_s15, %s863_s9, %s863_s9, %s864_s22  }
  0xd4 PF: > { %s449_s23 = sand.u32 1, %s833_s12   ;;  %p590_p3 = pnand %p550_p11, %p930_p6 }
  0xd5   : > { %s450_s18 = scalar_lea.sflag [#allocation4], %s449_s23 }
  0xd6   : > { %p591_p5 = pneg %p590_p3 }
  0xd8   : > { %828 = dma.done.wait (%p591_p5), %s450_s18, 512  }
  0xd9   : > { %830 = vsyncadd (%p591_p5), %s450_s18, 4294966784  ;;  %s18_s17 = sadd.s32 1, %s853_s17   ;;  %s1111_s12 = smov %s837_s13 }
  0xda   : > { %p15_p9 = scmp.ge.s32.totalorder %s18_s17, 4   ;;  %s1112_s13 = smov %s841_s14 }
  0xdb   : > { %s1113_s14 = smov %s974_s26  ;;  %s1114_s15 = smov %s849_s16 }
  0xdc   : > { %s1115_s16 = smov %s1117_s8  ;;  %17 = sbr.rel (!%p15_p9) target bundleno = 8 (0x8), region = 86 }
  0xe1   :  { %456 = vsyncpa [#allocation3], 1 }
  0xe2   :  { %458 = vsyncpa [#allocation3 + $0x1], 1 }
  0xe3   :  { %459 = vsyncpa [#allocation6], 1 }
  0xe4   :  { %460 = vsyncpa [#allocation4], 1 }
  0xe5   :  { %462 = vsyncpa [#allocation4 + $0x1], 1 }

</bundles_post_ra>
